<compile_context>
chip_gen: v7x
topology: tpu7x:2x2x1
jax: 0.10.0
libtpu: 0.0.40
codegen_flags: <defaults>
</compile_context>

<pallas_src>
import functools

import jax
import jax.numpy as jnp
from jax.experimental import pallas as pl
from jax.experimental.pallas import tpu as pltpu


def _round_up(x, m):
    return (x + m - 1) // m * m


def _head_kernel(x_ref, w1_ref, b1_ref, w2_ref, b2_ref, x0_ref, x1_ref):
    # Dropout is identity in eval/inference mode.
    # TODO(synk): training-mode dropout (config.final_dropout) not implemented;
    # eval-mode (identity) semantics are reproduced.
    x = x_ref[...].astype(w1_ref.dtype)                               # (TB, Hp) bf16
    h = jnp.dot(x, w1_ref[...],
                preferred_element_type=jnp.float32) + b1_ref[...]     # (TB, Hp) f32
    x0 = jnp.tanh(h)                                                  # f32 (EUP)
    x0_ref[...] = x0.astype(x0_ref.dtype)
    x1 = jnp.dot(x0.astype(w2_ref.dtype), w2_ref[...],
                 preferred_element_type=jnp.float32) + b2_ref[...]    # (TB, Lp) f32
    x1_ref[...] = x1.astype(x1_ref.dtype)


def _pad2(a, rows, cols):
    pr, pc = rows - a.shape[0], cols - a.shape[1]
    if pr or pc:
        a = jnp.pad(a, ((0, pr), (0, pc)))
    return a


def _pick_batch_tile(B, block_batch):
    """Largest sublane-aligned tile <= block_batch with minimal batch padding."""
    if B <= block_batch:
        return _round_up(max(B, 8), 8)
    n_tiles = -(-B // block_batch)            # ceil(B / block_batch)
    return _round_up(-(-B // n_tiles), 8)     # even split, rounded to sublanes


@functools.partial(jax.jit, static_argnames=("block_batch",))
def wav2vec2_classification_head(features, w_dense, b_dense, w_out, b_out,
                                 *, block_batch=512):
    """features: (B, H) float32.
    w_dense: (H, H) = dense.weight.T ; b_dense: (1, H)
    w_out:   (H, L) = out_proj.weight.T ; b_out: (1, L)
    Returns (x0, x1) with shapes (B, H) and (B, L).
    """
    B, H = features.shape
    L = w_out.shape[1]

    # Lane-dense (128) feature/label dims; sublane-aligned (8) batch tile.
    Hp = _round_up(H, 128)
    Lp = _round_up(L, 128)
    TB = _pick_batch_tile(B, block_batch)
    Bp = _round_up(B, TB)

    x_p = _pad2(features, Bp, Hp)                         # f32, zero-padded
    w1_p = _pad2(w_dense, Hp, Hp).astype(jnp.bfloat16)    # pre-cast once (not per-tile)
    b1_p = _pad2(b_dense, 1, Hp).astype(jnp.float32)
    w2_p = _pad2(w_out, Hp, Lp).astype(jnp.bfloat16)
    b2_p = _pad2(b_out, 1, Lp).astype(jnp.float32)

    grid = (Bp // TB,)

    x0_p, x1_p = pl.pallas_call(
        _head_kernel,
        out_shape=(
            jax.ShapeDtypeStruct((Bp, Hp), features.dtype),
            jax.ShapeDtypeStruct((Bp, Lp), features.dtype),
        ),
        grid=grid,
        in_specs=[
            pl.BlockSpec((TB, Hp), lambda i: (i, 0)),   # features: tiled over batch
            pl.BlockSpec((Hp, Hp), lambda i: (0, 0)),   # dense weight: VMEM-resident
            pl.BlockSpec((1, Hp), lambda i: (0, 0)),    # dense bias
            pl.BlockSpec((Hp, Lp), lambda i: (0, 0)),   # out_proj weight: VMEM-resident
            pl.BlockSpec((1, Lp), lambda i: (0, 0)),    # out_proj bias
        ],
        out_specs=(
            pl.BlockSpec((TB, Hp), lambda i: (i, 0)),   # x0 (tanh activations)
            pl.BlockSpec((TB, Lp), lambda i: (i, 0)),   # x1 (logits, lane-padded)
        ),
        compiler_params=pltpu.CompilerParams(
            dimension_semantics=("parallel",),          # megacore sharding
            vmem_limit_bytes=64 * 1024 * 1024,
        ),
    )(x_p, w1_p, b1_p, w2_p, b2_p)

    # Slice the zero padding away (pad rows/cols carry no real data).
    return x0_p[:B, :H], x1_p[:B, :L]


if __name__ == "__main__":
    # Small, deterministic synthetic config: hidden_size=32, num_labels=4, batch=8.
    B, H, L = 8, 32, 4
    key = jax.random.PRNGKey(0)
    k_x, k_w1, k_b1, k_w2, k_b2 = jax.random.split(key, 5)

    features = jax.random.normal(k_x, (B, H), dtype=jnp.float32)
    # Deterministic "Linear" parameters (stored pre-transposed: (in, out)).
    w_dense = jax.random.normal(k_w1, (H, H), dtype=jnp.float32) * 0.05
    b_dense = jax.random.normal(k_b1, (1, H), dtype=jnp.float32) * 0.01
    w_out = jax.random.normal(k_w2, (H, L), dtype=jnp.float32) * 0.05
    b_out = jax.random.normal(k_b2, (1, L), dtype=jnp.float32) * 0.01

    x0, x1 = wav2vec2_classification_head(features, w_dense, b_dense, w_out, b_out)
    jax.block_until_ready((x0, x1))

    # Reference in plain JAX (f32). Kernel uses bf16 matmul operands with f32
    # accumulation, so allow a bf16-sized tolerance.
    x0_ref = jnp.tanh(features @ w_dense + b_dense)
    x1_ref = x0_ref @ w_out + b_out
    assert x0.shape == (B, H) and x1.shape == (B, L)
    assert jnp.allclose(x0, x0_ref, atol=2e-2), float(jnp.max(jnp.abs(x0 - x0_ref)))
    assert jnp.allclose(x1, x1_ref, atol=2e-2), float(jnp.max(jnp.abs(x1 - x1_ref)))

    print("KERNEL_OK")
</pallas_src>

<mosaic_0001>
module attributes {stable_mosaic.version = 11 : i64} {
  func.func @_head_kernel(%arg0: i32, %arg1: memref<8x128xf32, #tpu.memory_space<vmem>>, %arg2: memref<128x128xbf16, #tpu.memory_space<vmem>>, %arg3: memref<1x128xf32, #tpu.memory_space<vmem>>, %arg4: memref<128x128xbf16, #tpu.memory_space<vmem>>, %arg5: memref<1x128xf32, #tpu.memory_space<vmem>>, %arg6: memref<8x128xf32, #tpu.memory_space<vmem>>, %arg7: memref<8x128xf32, #tpu.memory_space<vmem>>) attributes {dimension_semantics = [#tpu.dimension_semantics<parallel>], iteration_bounds = array<i64: 1>, scalar_prefetch = 0 : i64, scratch_operands = 0 : i64, tpu.core_type = #tpu.core_type<tc>, window_params = [{transform_indices = @transform_0, window_bounds = array<i64: 8, 128>}, {pipeline_mode = #tpu.pipeline_mode<synchronous>, transform_indices = @transform_1, window_bounds = array<i64: 128, 128>}, {pipeline_mode = #tpu.pipeline_mode<synchronous>, transform_indices = @transform_2, window_bounds = array<i64: 1, 128>}, {pipeline_mode = #tpu.pipeline_mode<synchronous>, transform_indices = @transform_3, window_bounds = array<i64: 128, 128>}, {pipeline_mode = #tpu.pipeline_mode<synchronous>, transform_indices = @transform_4, window_bounds = array<i64: 1, 128>}, {transform_indices = @transform_5, window_bounds = array<i64: 8, 128>}, {transform_indices = @transform_6, window_bounds = array<i64: 8, 128>}]} {
    %c0 = arith.constant 0 : index
    %c0_0 = arith.constant 0 : index
    %0 = vector.load %arg1[%c0, %c0_0] : memref<8x128xf32, #tpu.memory_space<vmem>>, vector<8x128xf32>
    %1 = arith.truncf %0 : vector<8x128xf32> to vector<8x128xbf16>
    %c0_1 = arith.constant 0 : index
    %c0_2 = arith.constant 0 : index
    %2 = vector.load %arg2[%c0_1, %c0_2] : memref<128x128xbf16, #tpu.memory_space<vmem>>, vector<128x128xbf16>
    %cst = arith.constant dense<0.000000e+00> : vector<8x128xf32>
    %3 = tpu.matmul %1, %2, %cst {dimension_numbers = #tpu.dot_dimension_numbers<[1], [0], [0], [1], [0, 0, 1, 1], [], []>} : vector<8x128xbf16>, vector<128x128xbf16>, vector<8x128xf32> -> vector<8x128xf32>
    %c0_3 = arith.constant 0 : index
    %c0_4 = arith.constant 0 : index
    %4 = vector.load %arg3[%c0_3, %c0_4] : memref<1x128xf32, #tpu.memory_space<vmem>>, vector<1x128xf32>
    %5 = vector.broadcast %4 : vector<1x128xf32> to vector<8x128xf32>
    %6 = arith.addf %3, %5 : vector<8x128xf32>
    %7 = math.tanh %6 : vector<8x128xf32>
    %c0_5 = arith.constant 0 : index
    %c0_6 = arith.constant 0 : index
    %8 = vector.load %arg6[%c0_5, %c0_6] : memref<8x128xf32, #tpu.memory_space<vmem>>, vector<8x128xf32>
    tpu.vector_store %arg6[%c0_5, %c0_6], %7 {strides = array<i32>} : memref<8x128xf32, #tpu.memory_space<vmem>>, vector<8x128xf32>,
    %9 = arith.truncf %7 : vector<8x128xf32> to vector<8x128xbf16>
    %c0_7 = arith.constant 0 : index
    %c0_8 = arith.constant 0 : index
    %10 = vector.load %arg4[%c0_7, %c0_8] : memref<128x128xbf16, #tpu.memory_space<vmem>>, vector<128x128xbf16>
    %cst_9 = arith.constant dense<0.000000e+00> : vector<8x128xf32>
    %11 = tpu.matmul %9, %10, %cst_9 {dimension_numbers = #tpu.dot_dimension_numbers<[1], [0], [0], [1], [0, 0, 1, 1], [], []>} : vector<8x128xbf16>, vector<128x128xbf16>, vector<8x128xf32> -> vector<8x128xf32>
    %c0_10 = arith.constant 0 : index
    %c0_11 = arith.constant 0 : index
    %12 = vector.load %arg5[%c0_10, %c0_11] : memref<1x128xf32, #tpu.memory_space<vmem>>, vector<1x128xf32>
    %13 = vector.broadcast %12 : vector<1x128xf32> to vector<8x128xf32>
    %14 = arith.addf %11, %13 : vector<8x128xf32>
    %c0_12 = arith.constant 0 : index
    %c0_13 = arith.constant 0 : index
    %15 = vector.load %arg7[%c0_12, %c0_13] : memref<8x128xf32, #tpu.memory_space<vmem>>, vector<8x128xf32>
    tpu.vector_store %arg7[%c0_12, %c0_13], %14 {strides = array<i32>} : memref<8x128xf32, #tpu.memory_space<vmem>>, vector<8x128xf32>,
    return
  }
  func.func @transform_0(%arg0: i32) -> (i32, i32) {
    %c0_i32 = arith.constant 0 : i32
    %c0_i32_0 = arith.constant 0 : i32
    return %arg0, %c0_i32 : i32, i32
  }
  func.func @transform_1(%arg0: i32) -> (i32, i32) {
    %c0_i32 = arith.constant 0 : i32
    %c0_i32_0 = arith.constant 0 : i32
    %c0_i32_1 = arith.constant 0 : i32
    return %c0_i32, %c0_i32_0 : i32, i32
  }
  func.func @transform_2(%arg0: i32) -> (i32, i32) {
    %c0_i32 = arith.constant 0 : i32
    %c0_i32_0 = arith.constant 0 : i32
    %c0_i32_1 = arith.constant 0 : i32
    return %c0_i32, %c0_i32_0 : i32, i32
  }
  func.func @transform_3(%arg0: i32) -> (i32, i32) {
    %c0_i32 = arith.constant 0 : i32
    %c0_i32_0 = arith.constant 0 : i32
    %c0_i32_1 = arith.constant 0 : i32
    return %c0_i32, %c0_i32_0 : i32, i32
  }
  func.func @transform_4(%arg0: i32) -> (i32, i32) {
    %c0_i32 = arith.constant 0 : i32
    %c0_i32_0 = arith.constant 0 : i32
    %c0_i32_1 = arith.constant 0 : i32
    return %c0_i32, %c0_i32_0 : i32, i32
  }
  func.func @transform_5(%arg0: i32) -> (i32, i32) {
    %c0_i32 = arith.constant 0 : i32
    %c0_i32_0 = arith.constant 0 : i32
    return %arg0, %c0_i32 : i32, i32
  }
  func.func @transform_6(%arg0: i32) -> (i32, i32) {
    %c0_i32 = arith.constant 0 : i32
    %c0_i32_0 = arith.constant 0 : i32
    return %arg0, %c0_i32 : i32, i32
  }
}

</mosaic_0001>

<bundles_post_ra>
// kernel: wav2vec2_classification_head.1
= control target key start
LH: loop header
LB: loop body
LE: loop exit
PB: predicated region body
PF: predicated region fallthrough
CT: control target
= control target key end

     0   :  { %12 = vsyncpa [#allocation3], 0  ;;  %s745_s0 = inlined_call_operand.hbm [shape: f32[8,128], index: 0, kind: input, shape index: {}]   ;;  %s746_s1 = inlined_call_operand.hbm [shape: bf16[128,128], index: 1, kind: input, shape index: {}]   ;;  %s747_s2 = inlined_call_operand.hbm [shape: f32[1,128], index: 2, kind: input, shape index: {}]   ;;  %s748_s3 = inlined_call_operand.hbm [shape: bf16[128,128], index: 3, kind: input, shape index: {}]   ;;  %s749_s4 = inlined_call_operand.hbm [shape: f32[1,128], index: 4, kind: input, shape index: {}]   ;;  %s750_s5 = inlined_call_operand.hbm [shape: f32[8,128], index: 5, kind: output, shape index: {0}]   ;;  %s751_s6 = inlined_call_operand.hbm [shape: f32[8,128], index: 6, kind: output, shape index: {1}]  }
   0x1   :  { %13 = vsyncpa [#allocation6], 0 }
   0x2   :  { %14 = vsyncpa [#allocation9], 0 }
   0x3   :  { %15 = vsyncpa [#allocation4], 0 }
   0x4   :  { %16 = vsyncpa [#allocation13], 0  ;;  %s615_s21 = smov [#allocation5]   ;;  %s451_s25 = scalar_lea.hbm %s746_s1, 1024 }
   0x5   :  { %s32_s22 = sshll.u32 %s615_s21, 4  ;;  %p452_p0 = scmp.ne.s32.totalorder %s746_s1, %s451_s25  ;;  %s33_s22 = int_to_ptr.vmem [resolvable:$true] %s32_s22 }
   0x6   :  { %p455_p1 = scmp.lt.u32.totalorder %s451_s25, %s746_s1 }
   0x8   :  { %p457_p2 = pnand %p455_p1, %p452_p0 }
   0xa   :  { %460 = shalt.err (!%p457_p2)
}
   0xb   :  { %s461_s30 = scalar_lea.vmem %s33_s22, 1024  ;;  %p466_p4 = scmp.lt.s32.totalorder %s33_s22, %s33_s22 }
   0xc   :  { %p462_p3 = scmp.ne.s32.totalorder %s33_s22, %s461_s30  ;;  %p467_p5 = scmp.lt.s32.totalorder %s461_s30, %s461_s30 }
   0xe   :  { %p468_p6 = por %p467_p5, %p466_p4 }
  0x10   :  { %p469_p7 = pnand %p468_p6, %p462_p3 }
  0x12   :  { %472 = shalt.err (!%p469_p7)
}
  0x13   :  { %s616_s7 = smov 64   ;;  %s617_s8 = smov 4  }
  0x14   :  { %38 = dma.hbm_to_vmem [thread:$0]  %s746_s1, 1024, %s33_s22, [#allocation6], %s616_s7, %s616_s7, %s617_s8  }
  0x15   :  { %s618_s11 = smov [#allocation8]   ;;  %s619_s13 = smov [#allocation2]  }
  0x16   :  { %s54_s12 = sshll.u32 %s618_s11, 4  ;;  %s23_s14 = sshll.u32 %s619_s13, 4  ;;  %s55_s12 = int_to_ptr.vmem [resolvable:$true] %s54_s12  ;;  %s24_s14 = int_to_ptr.vmem [resolvable:$true] %s23_s14 }
  0x17   :  { %s473_s17 = scalar_lea.hbm %s748_s3, 1024 }
  0x18   :  { %p474_p8 = scmp.ne.s32.totalorder %s748_s3, %s473_s17  ;;  %p477_p9 = scmp.lt.u32.totalorder %s473_s17, %s748_s3 }
  0x1a   :  { %p479_p10 = pnand %p477_p9, %p474_p8 }
  0x1c   :  { %482 = shalt.err (!%p479_p10)
}
  0x1d   :  { %s483_s1 = scalar_lea.vmem %s55_s12, 1024  ;;  %p488_p12 = scmp.lt.s32.totalorder %s55_s12, %s55_s12 }
  0x1e   :  { %p484_p11 = scmp.ne.s32.totalorder %s55_s12, %s483_s1  ;;  %p489_p13 = scmp.lt.s32.totalorder %s483_s1, %s483_s1 }
  0x20   :  { %p490_p0 = por %p489_p13, %p488_p12 }
  0x22   :  { %p491_p1 = pnand %p490_p0, %p484_p11 }
  0x24   :  { %494 = shalt.err (!%p491_p1)
}
  0x25   :  { %60 = dma.hbm_to_vmem [thread:$0]  %s748_s3, 1024, %s55_s12, [#allocation9], %s616_s7, %s616_s7, %s617_s8  }
  0x26   :  { %s495_s26 = scalar_lea.hbm %s745_s0, 128 }
  0x27   :  { %p496_p2 = scmp.ne.s32.totalorder %s745_s0, %s495_s26  ;;  %p499_p3 = scmp.lt.u32.totalorder %s495_s26, %s745_s0 }
  0x29   :  { %p501_p4 = pnand %p499_p3, %p496_p2 }
  0x2b   :  { %504 = shalt.err (!%p501_p4)
}
  0x2c   :  { %s505_s9 = scalar_lea.vmem %s24_s14, 128  ;;  %p510_p6 = scmp.lt.s32.totalorder %s24_s14, %s24_s14 }
  0x2d   :  { %p506_p5 = scmp.ne.s32.totalorder %s24_s14, %s505_s9  ;;  %p511_p7 = scmp.lt.s32.totalorder %s505_s9, %s505_s9 }
  0x2f   :  { %p512_p8 = por %p511_p7, %p510_p6 }
  0x31   :  { %p513_p9 = pnand %p512_p8, %p506_p5 }
  0x33   :  { %516 = shalt.err (!%p513_p9)
}
  0x34   :  { %26 = dma.hbm_to_vmem [thread:$0]  %s745_s0, 128, %s24_s14, [#allocation3]  }
  0x35   :  { %s620_s8 = smov [#allocation7]   ;;  %s621_s11 = smov [#allocation10]  }
  0x36   :  { %s45_s10 = sshll.u32 %s620_s8, 4  ;;  %s67_s12 = sshll.u32 %s621_s11, 4  ;;  %s46_s10 = int_to_ptr.vmem [resolvable:$true] %s45_s10  ;;  %s68_s12 = int_to_ptr.vmem [resolvable:$true] %s67_s12 }
  0x37   :  { %s517_s16 = scalar_lea.hbm %s747_s2, 16 }
  0x38   :  { %p518_p10 = scmp.ne.s32.totalorder %s747_s2, %s517_s16  ;;  %p521_p11 = scmp.lt.u32.totalorder %s517_s16, %s747_s2 }
  0x3a   :  { %p523_p12 = pnand %p521_p11, %p518_p10 }
  0x3c   :  { %526 = shalt.err (!%p523_p12)
}
  0x3d   :  { %s527_s0 = scalar_lea.vmem %s46_s10, 16  ;;  %s531_s14 = scalar_lea.vmem %s46_s10, 32 }
  0x3e   :  { %p528_p13 = scmp.ne.s32.totalorder %s46_s10, %s527_s0  ;;  %p532_p0 = scmp.lt.s32.totalorder %s46_s10, %s46_s10 }
  0x3f   :  { %p533_p1 = scmp.lt.s32.totalorder %s531_s14, %s527_s0 }
  0x41   :  { %p534_p2 = por %p533_p1, %p532_p0 }
  0x43   :  { %p535_p3 = pnand %p534_p2, %p528_p13 }
  0x45   :  { %538 = shalt.err (!%p535_p3)
}
  0x46   :  { %48 = dma.hbm_to_vmem [thread:$0]  %s747_s2, 16, %s46_s10, [#allocation6]  }
  0x47   :  { %s539_s24 = scalar_lea.hbm %s749_s4, 16 }
  0x48   :  { %p540_p4 = scmp.ne.s32.totalorder %s749_s4, %s539_s24  ;;  %p543_p5 = scmp.lt.u32.totalorder %s539_s24, %s749_s4 }
  0x4a   :  { %p545_p6 = pnand %p543_p5, %p540_p4 }
  0x4c   :  { %548 = shalt.err (!%p545_p6)
}
  0x4d   :  { %s549_s29 = scalar_lea.vmem %s68_s12, 16  ;;  %s553_s30 = scalar_lea.vmem %s68_s12, 32 }
  0x4e   :  { %p550_p7 = scmp.ne.s32.totalorder %s68_s12, %s549_s29  ;;  %p554_p8 = scmp.lt.s32.totalorder %s68_s12, %s68_s12 }
  0x4f   :  { %p555_p9 = scmp.lt.s32.totalorder %s553_s30, %s549_s29 }
  0x51   :  { %p556_p10 = por %p555_p9, %p554_p8 }
  0x53   :  { %p557_p11 = pnand %p556_p10, %p550_p7 }
  0x55   :  { %560 = shalt.err (!%p557_p11)
}
  0x56   :  { %70 = dma.hbm_to_vmem [thread:$0]  %s749_s4, 16, %s68_s12, [#allocation9]  }
  0x57   :  { %605 = dma.done.wait [#allocation3], 128  }
  0x58   :  { %606 = vsyncadd [#allocation3], 4294967168 }
  0x59   :  { %607 = dma.done.wait [#allocation6], 1040  }
  0x5a   :  { %608 = vsyncadd [#allocation6], 4294966256 }
  0x5b   :  { %609 = dma.done.wait [#allocation9], 1040  }
  0x5c   :  { %610 = vsyncadd [#allocation9], 4294966256  ;;  %v622_v0 = vmov 0.0   ;;  %vm623_vm0 = vmmov 0   ;;  %v433_v1 = vld [vmem:[#allocation5] sm:$0xff]   ;;  %v434_v2 = vld [vmem:[#allocation5 + $0x8] sm:$0xff]  }
  0x5d   :  { %382 = vmatprep.subr.bf16.mxu0 %v622_v0  ;;  %398 = vmatprep.mubr.msk.bf16.mxu0 %vm623_vm0, %v622_v0  ;;  %v435_v3 = vld [vmem:[#allocation5 + $0x10] sm:$0xff]   ;;  %v441_v4 = vld [vmem:[#allocation8] sm:$0xff]   ;;  %v436_v5 = vld [vmem:[#allocation5 + $0x18] sm:$0xff]   ;;  %s624_s4 = smov [#allocation11]  }
  0x5e   :  { %402 = vmatprep.subr.bf16.mxu1 %v622_v0  ;;  %418 = vmatprep.mubr.msk.bf16.mxu1 %vm623_vm0, %v622_v0  ;;  %v442_v6 = vld [vmem:[#allocation8 + $0x8] sm:$0xff]   ;;  %v437_v7 = vld [vmem:[#allocation5 + $0x20] sm:$0xff]   ;;  %v443_v8 = vld [vmem:[#allocation8 + $0x10] sm:$0xff]   ;;  %s321_s3 = sshll.u32 %s624_s4, 4  ;;  %s322_s3 = int_to_ptr.vmem [resolvable:$true] %s321_s3 }
  0x5f   :  { %383 = vmatpush3.bf16.msra.mxu0 %v433_v1  ;;  %403 = vmatpush3.bf16.msra.mxu1 %v441_v4  ;;  %v438_v9 = vld [vmem:[#allocation5 + $0x28] sm:$0xff]   ;;  %v444_v10 = vld [vmem:[#allocation8 + $0x18] sm:$0xff]   ;;  %v439_v11 = vld [vmem:[#allocation5 + $0x30] sm:$0xff]   ;;  %s561_s7 = scalar_lea.vmem %s322_s3, 128  ;;  %p566_p13 = scmp.lt.s32.totalorder %s322_s3, %s322_s3 }
  0x60   :  { %384 = vmatprep.subr.bf16.mxu0 %v622_v0  ;;  %404 = vmatprep.subr.bf16.mxu1 %v622_v0  ;;  %v440_v12 = vld [vmem:[#allocation5 + $0x38] sm:$0xff]   ;;  %v445_v15 = vld [vmem:[#allocation8 + $0x20] sm:$0xff]   ;;  %v446_v16 = vld [vmem:[#allocation8 + $0x28] sm:$0xff]   ;;  %p562_p12 = scmp.ne.s32.totalorder %s322_s3, %s561_s7  ;;  %p567_p0 = scmp.lt.s32.totalorder %s561_s7, %s561_s7 }
  0x61   :  { %v87_v13 = vld [vmem:[#allocation2] sm:$0xff]  ;;  %v346_v19 = vld [vmem:[#allocation7] ss:$0 sm:$0xff] }
  0x62   :  { %v88_v14 = vpack.c.bf16 %v87_v13, %v87_v13  ;;  %v447_v17 = vld [vmem:[#allocation8 + $0x30] sm:$0xff]   ;;  %v448_v18 = vld [vmem:[#allocation8 + $0x38] sm:$0xff]   ;;  %p568_p1 = por %p567_p0, %p566_p13 }
  0x63   :  { %385 = vmatpush3.bf16.msra.mxu0 %v434_v2  ;;  %405 = vmatpush3.bf16.msra.mxu1 %v442_v6 }
  0x64   :  { %386 = vmatprep.subr.bf16.mxu0 %v622_v0  ;;  %406 = vmatprep.subr.bf16.mxu1 %v622_v0  ;;  %p569_p2 = pnand %p568_p1, %p562_p12 }
  0x67   :  { %387 = vmatpush3.bf16.msra.mxu0 %v435_v3  ;;  %407 = vmatpush3.bf16.msra.mxu1 %v443_v8 }
  0x68   :  { %388 = vmatprep.subr.bf16.mxu0 %v622_v0  ;;  %408 = vmatprep.subr.bf16.mxu1 %v622_v0 }
  0x6b   :  { %389 = vmatpush3.bf16.msra.mxu0 %v436_v5  ;;  %409 = vmatpush3.bf16.msra.mxu1 %v444_v10 }
  0x6c   :  { %390 = vmatprep.subr.bf16.mxu0 %v622_v0  ;;  %410 = vmatprep.subr.bf16.mxu1 %v622_v0 }
  0x6f   :  { %391 = vmatpush3.bf16.msra.mxu0 %v437_v7  ;;  %411 = vmatpush3.bf16.msra.mxu1 %v445_v15 }
  0x70   :  { %392 = vmatprep.subr.bf16.mxu0 %v622_v0  ;;  %412 = vmatprep.subr.bf16.mxu1 %v622_v0 }
  0x73   :  { %393 = vmatpush3.bf16.msra.mxu0 %v438_v9  ;;  %413 = vmatpush3.bf16.msra.mxu1 %v446_v16 }
  0x74   :  { %394 = vmatprep.subr.bf16.mxu0 %v622_v0  ;;  %414 = vmatprep.subr.bf16.mxu1 %v622_v0 }
  0x77   :  { %395 = vmatpush3.bf16.msra.mxu0 %v439_v11  ;;  %415 = vmatpush3.bf16.msra.mxu1 %v447_v17 }
  0x78   :  { %396 = vmatprep.subr.bf16.mxu0 %v622_v0  ;;  %416 = vmatprep.subr.bf16.mxu1 %v622_v0 }
  0x7b   :  { %397 = vmatpush3.bf16.msra.mxu0 %v440_v12  ;;  %417 = vmatpush3.bf16.msra.mxu1 %v448_v18 }
  0x7e   :  { %399 = vmatmul.mubr.bf16.vlgmr.msra.gmra.mrb[0].mxu0 %v88_v14 }
 0x151   :  { %v194_v20 = vpop.f32.mrb[0].mxu0 }
 0x152   :  { %v195_v21 = vadd.f32 %v346_v19, %v194_v20  ;;  %v400_v22 = vpop.f32.mrb[1].mxu0 }
 0x153   :  { %v197_v23 = vpop.f32.mrb[2].mxu0 }
 0x154   :  { %449 = vtanh.f32 %v195_v21  ;;  %v401_v24 = vpop.f32.mrb[3].mxu0 }
 0x15e   :  { %v450_v25 = vpop.eup %449 }
 0x15f   :  { %201 = vst [vmem:[#allocation11] sm:$0xff] %v450_v25  ;;  %v202_v26 = vpack.c.bf16 %v450_v25, %v450_v25 }
 0x161   :  { %419 = vmatmul.mubr.bf16.vlgmr.msra.gmra.mrb[0].mxu1 %v202_v26 }
 0x162   :  { %572 = shalt.err (!%p569_p2)
}
 0x163   :  { %s573_s11 = scalar_lea.hbm %s750_s5, 128 }
 0x164   :  { %p574_p3 = scmp.ne.s32.totalorder %s750_s5, %s573_s11  ;;  %p577_p4 = scmp.lt.u32.totalorder %s573_s11, %s750_s5 }
 0x166   :  { %p579_p5 = pnand %p577_p4, %p574_p3 }
 0x168   :  { %582 = shalt.err (!%p579_p5)
}
 0x169   :  { %324 = dma.vmem_to_hbm [thread:$0]  %s322_s3, 128, %s750_s5, [#allocation4]   ;;  %v355_v27 = vld [vmem:[#allocation10] ss:$0 sm:$0xff] }
 0x16a   :  { %s625_s19 = smov [#allocation12]  }
 0x16b   :  { %s331_s20 = sshll.u32 %s625_s19, 4  ;;  %s332_s20 = int_to_ptr.vmem [resolvable:$true] %s331_s20 }
 0x16c   :  { %s583_s0 = scalar_lea.vmem %s332_s20, 128  ;;  %p588_p7 = scmp.lt.s32.totalorder %s332_s20, %s332_s20 }
 0x16d   :  { %p584_p6 = scmp.ne.s32.totalorder %s332_s20, %s583_s0  ;;  %p589_p8 = scmp.lt.s32.totalorder %s583_s0, %s583_s0 }
 0x16f   :  { %p590_p9 = por %p589_p8, %p588_p7 }
 0x171   :  { %p591_p10 = pnand %p590_p9, %p584_p6 }
 0x234   :  { %v308_v28 = vpop.f32.mrb[0].mxu1 }
 0x235   :  { %v309_v29 = vadd.f32 %v355_v27, %v308_v28  ;;  %v420_v30 = vpop.f32.mrb[1].mxu1 }
 0x236   :  { %v311_v31 = vpop.f32.mrb[2].mxu1 }
 0x237   :  { %314 = vst [vmem:[#allocation12] sm:$0xff] %v309_v29  ;;  %v421_v32 = vpop.f32.mrb[3].mxu1 }
 0x238   :  { %594 = shalt.err (!%p591_p10)
}
 0x239   :  { %s595_s5 = scalar_lea.hbm %s751_s6, 128 }
 0x23a   :  { %p596_p11 = scmp.ne.s32.totalorder %s751_s6, %s595_s5  ;;  %p599_p12 = scmp.lt.u32.totalorder %s595_s5, %s751_s6 }
 0x23c   :  { %p601_p13 = pnand %p599_p12, %p596_p11 }
 0x23e   :  { %604 = shalt.err (!%p601_p13)
}
 0x23f   :  { %334 = dma.vmem_to_hbm [thread:$0]  %s332_s20, 128, %s751_s6, [#allocation13]  }
 0x240   :  { %611 = dma.done.wait [#allocation4], 128  }
 0x241   :  { %612 = vsyncadd [#allocation4], 4294967168 }
 0x242   :  { %613 = dma.done.wait [#allocation13], 128  }
 0x243   :  { %614 = vsyncadd [#allocation13], 4294967168 }
 0x244   :  { %341 = vsyncpa [#allocation3], 1 }
 0x245   :  { %342 = vsyncpa [#allocation6], 1 }
 0x246   :  { %343 = vsyncpa [#allocation9], 1 }
 0x247   :  { %344 = vsyncpa [#allocation4], 1 }
 0x248   :  { %345 = vsyncpa [#allocation13], 1 }

</bundles_post_ra>
